<compile_context>
chip_gen: v5e
topology: v5e:2x2
jax: 0.10.0
libtpu: 0.0.40
codegen_flags: <defaults>
</compile_context>

<pallas_src>
import jax
import jax.numpy as jnp
from jax.experimental import pallas as pl
from jax.experimental.pallas import tpu as pltpu


def _contextual_embedding_kernel(idx_ref, cont_ref, w_emb_ref, w_proj_ref, out_ref):
    """Fused embedding-gather + linear projection (+ folded bias).

    idx_ref   : (TR, P)       int32   packed binary indices (P tokens per row)
    cont_ref  : (TR, P*F)     cdtype  packed continuous features
    w_emb_ref : (P*NB, P*D)   cdtype  block-diag(embedding_table + bias)
    w_proj_ref: (P*F,  P*D)   cdtype  block-diag(linear_weight.T)
    out_ref   : (TR, P*D)     float32
    """
    tr, n_pack = idx_ref.shape
    k_emb = w_emb_ref.shape[0]
    nb = k_emb // n_pack
    cdtype = w_emb_ref.dtype

    # One-hot over the packed / block-diagonal K axis: the token in position p
    # with index i hits column p*NB + i.  Built in f32 (exact 0/1), cast once
    # right before feeding the MXU.
    col = jax.lax.broadcasted_iota(jnp.int32, (tr, k_emb), 1)
    one_hot = jnp.zeros((tr, k_emb), jnp.float32)
    for p in range(n_pack):                         # static unroll, n_pack <= 128 // D
        target = idx_ref[:, p:p + 1] + p * nb       # (TR, 1)
        one_hot = jnp.where(col == target, 1.0, one_hot)

    emb = jnp.dot(one_hot.astype(cdtype), w_emb_ref[...],
                  preferred_element_type=jnp.float32)            # (TR, P*D)
    proj = jnp.dot(cont_ref[...], w_proj_ref[...],
                   preferred_element_type=jnp.float32)           # (TR, P*D)
    out_ref[...] = (emb + proj).astype(out_ref.dtype)


def extended_contextual_embedding2(binary_data, continuous_data, emb_table, w, b,
                                   *, tile_rows=512, compute_dtype=jnp.bfloat16):
    """binary_data (B,S) int32, continuous_data (B,S,F) f32,
    emb_table (NB,D) f32, w (D,F) f32 (torch Linear layout), b (D,) f32
    -> (B, S, D) float32."""
    B, S = binary_data.shape
    F = continuous_data.shape[-1]
    NB, D = emb_table.shape
    N = B * S

    # Pack P tokens per kernel row so the output lane width is P*D (128 when possible).
    P = 128 // D if (D < 128 and 128 % D == 0) else 1

    # Packed rows, padded to a whole number of (multiple-of-16) tiles.
    R = pl.cdiv(N, P)
    tile_r = min(tile_rows, R)
    tile_r = max(16, ((tile_r + 15) // 16) * 16)
    R_pad = pl.cdiv(R, tile_r) * tile_r
    num_tiles = R_pad // tile_r
    n_pad_tok = R_pad * P

    # --- Pack / pad inputs (wrapper-side reshapes are row-major views). ---
    idx_flat = binary_data.reshape(N).astype(jnp.int32)
    idx_flat = jnp.pad(idx_flat, (0, n_pad_tok - N))
    idx_packed = idx_flat.reshape(R_pad, P)

    cont_flat = continuous_data.reshape(N, F).astype(compute_dtype)
    cont_flat = jnp.pad(cont_flat, ((0, n_pad_tok - N), (0, 0)))
    cont_packed = cont_flat.reshape(R_pad, P * F)

    # --- Block-diagonal, bias-folded weights (VMEM-resident across the grid). ---
    eye_p = jnp.eye(P, dtype=jnp.float32)
    emb_eff = emb_table.astype(jnp.float32) + b.astype(jnp.float32)[None, :]
    w_emb_block = jnp.kron(eye_p, emb_eff).astype(compute_dtype)                   # (P*NB, P*D)
    w_proj_block = jnp.kron(
        eye_p, jnp.transpose(w).astype(jnp.float32)).astype(compute_dtype)         # (P*F, P*D)

    w_bytes = jnp.dtype(compute_dtype).itemsize
    cost = pl.CostEstimate(
        flops=2 * R_pad * (P * NB + P * F) * (P * D),
        transcendentals=0,
        bytes_accessed=(R_pad * P * 4
                        + R_pad * P * F * w_bytes
                        + (P * NB + P * F) * P * D * w_bytes
                        + R_pad * P * D * 4))

    out_packed = pl.pallas_call(
        _contextual_embedding_kernel,
        out_shape=jax.ShapeDtypeStruct((R_pad, P * D), jnp.float32),
        grid=(num_tiles,),
        in_specs=[
            pl.BlockSpec((tile_r, P), lambda i: (i, 0)),          # idx tiles
            pl.BlockSpec((tile_r, P * F), lambda i: (i, 0)),      # continuous tiles
            pl.BlockSpec((P * NB, P * D), lambda i: (0, 0)),      # resident table (+bias)
            pl.BlockSpec((P * F, P * D), lambda i: (0, 0)),       # resident projection
        ],
        out_specs=pl.BlockSpec((tile_r, P * D), lambda i: (i, 0)),
        compiler_params=pltpu.CompilerParams(dimension_semantics=("parallel",)),
        cost_estimate=cost,
    )(idx_packed, cont_packed, w_emb_block, w_proj_block)

    # (R_pad, P*D) row-major == (R_pad*P, D) token-major; drop padding rows.
    return out_packed.reshape(R_pad * P, D)[:N].reshape(B, S, D)


def _reference(binary_data, continuous_data, emb_table, w, b):
    emb = emb_table[binary_data]                                   # (B, S, D)
    proj = jnp.einsum("bsf,df->bsd", continuous_data, w) + b       # (B, S, D)
    return emb + proj


if __name__ == "__main__":
    # Small but non-trivial config: N = 252 exercises both token packing (P=4)
    # and tile padding, and tile_rows=16 gives a 4-step pipelined grid.
    B, S = 4, 63
    d_model = 32
    num_binary_features = 16
    num_continuous_features = 8

    key = jax.random.PRNGKey(0)
    k_emb, k_w, k_b, k_idx, k_cont = jax.random.split(key, 5)

    emb_table = jax.random.normal(k_emb, (num_binary_features, d_model), jnp.float32)
    w = jax.random.normal(k_w, (d_model, num_continuous_features), jnp.float32) * 0.1
    b = jax.random.normal(k_b, (d_model,), jnp.float32) * 0.1

    binary_data = jax.random.randint(k_idx, (B, S), 0, num_binary_features, jnp.int32)
    continuous_data = jax.random.normal(
        k_cont, (B, S, num_continuous_features), jnp.float32)

    ref = _reference(binary_data, continuous_data, emb_table, w, b)

    # Exact f32 path (tight tolerance).
    out_f32 = extended_contextual_embedding2(
        binary_data, continuous_data, emb_table, w, b,
        tile_rows=16, compute_dtype=jnp.float32)
    out_f32 = jax.block_until_ready(out_f32)
    assert out_f32.shape == (B, S, d_model)
    assert jnp.allclose(out_f32, ref, atol=1e-5, rtol=1e-5), "f32 mismatch vs reference"

    # Default bandwidth-optimized bf16-input / f32-accumulate path.
    out_bf16 = extended_contextual_embedding2(
        binary_data, continuous_data, emb_table, w, b, tile_rows=16)
    out_bf16 = jax.block_until_ready(out_bf16)
    assert out_bf16.shape == (B, S, d_model)
    assert jnp.allclose(out_bf16, ref, atol=6e-2, rtol=6e-2), "bf16 mismatch vs reference"

    print("KERNEL_OK")
</pallas_src>

<mosaic_0001>
module attributes {stable_mosaic.version = 11 : i64} {
  func.func @_contextual_embedding_kernel(%arg0: i32, %arg1: memref<16x4xi32, #tpu.memory_space<vmem>>, %arg2: memref<16x32xf32, #tpu.memory_space<vmem>>, %arg3: memref<64x128xf32, #tpu.memory_space<vmem>>, %arg4: memref<32x128xf32, #tpu.memory_space<vmem>>, %arg5: memref<16x128xf32, #tpu.memory_space<vmem>>) attributes {dimension_semantics = [#tpu.dimension_semantics<parallel>], iteration_bounds = array<i64: 4>, scalar_prefetch = 0 : i64, scratch_operands = 0 : i64, tpu.core_type = #tpu.core_type<tc>, window_params = [{transform_indices = @transform_0, window_bounds = array<i64: 16, 4>}, {transform_indices = @transform_1, window_bounds = array<i64: 16, 32>}, {pipeline_mode = #tpu.pipeline_mode<synchronous>, transform_indices = @transform_2, window_bounds = array<i64: 64, 128>}, {pipeline_mode = #tpu.pipeline_mode<synchronous>, transform_indices = @transform_3, window_bounds = array<i64: 32, 128>}, {transform_indices = @transform_4, window_bounds = array<i64: 16, 128>}]} {
    %0 = tpu.iota {dimensions = array<i32: 1>} : vector<16x64xi32>
    %cst = arith.constant 0.000000e+00 : f32
    %1 = vector.broadcast %cst : f32 to vector<16x64xf32>
    %c0 = arith.constant 0 : index
    %c0_0 = arith.constant 0 : index
    %2 = vector.load %arg1[%c0, %c0_0] : memref<16x4xi32, #tpu.memory_space<vmem>>, vector<16x1xi32>
    %c0_i32 = arith.constant 0 : i32
    %3 = vector.broadcast %c0_i32 : i32 to vector<16x1xi32>
    %4 = arith.addi %2, %3 : vector<16x1xi32>
    %5 = vector.broadcast %4 : vector<16x1xi32> to vector<16x64xi32>
    %6 = arith.cmpi eq, %0, %5 : vector<16x64xi32>
    %cst_1 = arith.constant 1.000000e+00 : f32
    %7 = vector.broadcast %cst_1 : f32 to vector<16x64xf32>
    %8 = arith.select %6, %7, %1 : vector<16x64xi1>, vector<16x64xf32>
    %c0_2 = arith.constant 0 : index
    %c1 = arith.constant 1 : index
    %9 = vector.load %arg1[%c0_2, %c1] : memref<16x4xi32, #tpu.memory_space<vmem>>, vector<16x1xi32>
    %c16_i32 = arith.constant 16 : i32
    %10 = vector.broadcast %c16_i32 : i32 to vector<16x1xi32>
    %11 = arith.addi %9, %10 : vector<16x1xi32>
    %12 = vector.broadcast %11 : vector<16x1xi32> to vector<16x64xi32>
    %13 = arith.cmpi eq, %0, %12 : vector<16x64xi32>
    %cst_3 = arith.constant 1.000000e+00 : f32
    %14 = vector.broadcast %cst_3 : f32 to vector<16x64xf32>
    %15 = arith.select %13, %14, %8 : vector<16x64xi1>, vector<16x64xf32>
    %c0_4 = arith.constant 0 : index
    %c2 = arith.constant 2 : index
    %16 = vector.load %arg1[%c0_4, %c2] : memref<16x4xi32, #tpu.memory_space<vmem>>, vector<16x1xi32>
    %c32_i32 = arith.constant 32 : i32
    %17 = vector.broadcast %c32_i32 : i32 to vector<16x1xi32>
    %18 = arith.addi %16, %17 : vector<16x1xi32>
    %19 = vector.broadcast %18 : vector<16x1xi32> to vector<16x64xi32>
    %20 = arith.cmpi eq, %0, %19 : vector<16x64xi32>
    %cst_5 = arith.constant 1.000000e+00 : f32
    %21 = vector.broadcast %cst_5 : f32 to vector<16x64xf32>
    %22 = arith.select %20, %21, %15 : vector<16x64xi1>, vector<16x64xf32>
    %c0_6 = arith.constant 0 : index
    %c3 = arith.constant 3 : index
    %23 = vector.load %arg1[%c0_6, %c3] : memref<16x4xi32, #tpu.memory_space<vmem>>, vector<16x1xi32>
    %c48_i32 = arith.constant 48 : i32
    %24 = vector.broadcast %c48_i32 : i32 to vector<16x1xi32>
    %25 = arith.addi %23, %24 : vector<16x1xi32>
    %26 = vector.broadcast %25 : vector<16x1xi32> to vector<16x64xi32>
    %27 = arith.cmpi eq, %0, %26 : vector<16x64xi32>
    %cst_7 = arith.constant 1.000000e+00 : f32
    %28 = vector.broadcast %cst_7 : f32 to vector<16x64xf32>
    %29 = arith.select %27, %28, %22 : vector<16x64xi1>, vector<16x64xf32>
    %c0_8 = arith.constant 0 : index
    %c0_9 = arith.constant 0 : index
    %30 = vector.load %arg3[%c0_8, %c0_9] : memref<64x128xf32, #tpu.memory_space<vmem>>, vector<64x128xf32>
    %cst_10 = arith.constant dense<0.000000e+00> : vector<16x128xf32>
    %31 = tpu.matmul %29, %30, %cst_10 {dimension_numbers = #tpu.dot_dimension_numbers<[1], [0], [0], [1], [0, 0, 1, 1], [], []>} : vector<16x64xf32>, vector<64x128xf32>, vector<16x128xf32> -> vector<16x128xf32>
    %c0_11 = arith.constant 0 : index
    %c0_12 = arith.constant 0 : index
    %32 = vector.load %arg2[%c0_11, %c0_12] : memref<16x32xf32, #tpu.memory_space<vmem>>, vector<16x32xf32>
    %c0_13 = arith.constant 0 : index
    %c0_14 = arith.constant 0 : index
    %33 = vector.load %arg4[%c0_13, %c0_14] : memref<32x128xf32, #tpu.memory_space<vmem>>, vector<32x128xf32>
    %cst_15 = arith.constant dense<0.000000e+00> : vector<16x128xf32>
    %34 = tpu.matmul %32, %33, %cst_15 {dimension_numbers = #tpu.dot_dimension_numbers<[1], [0], [0], [1], [0, 0, 1, 1], [], []>} : vector<16x32xf32>, vector<32x128xf32>, vector<16x128xf32> -> vector<16x128xf32>
    %35 = arith.addf %31, %34 : vector<16x128xf32>
    %c0_16 = arith.constant 0 : index
    %c0_17 = arith.constant 0 : index
    %36 = vector.load %arg5[%c0_16, %c0_17] : memref<16x128xf32, #tpu.memory_space<vmem>>, vector<16x128xf32>
    tpu.vector_store %arg5[%c0_16, %c0_17], %35 {strides = array<i32>} : memref<16x128xf32, #tpu.memory_space<vmem>>, vector<16x128xf32>,
    return
  }
  func.func @transform_0(%arg0: i32) -> (i32, i32) {
    %c0_i32 = arith.constant 0 : i32
    %c0_i32_0 = arith.constant 0 : i32
    return %arg0, %c0_i32 : i32, i32
  }
  func.func @transform_1(%arg0: i32) -> (i32, i32) {
    %c0_i32 = arith.constant 0 : i32
    %c0_i32_0 = arith.constant 0 : i32
    return %arg0, %c0_i32 : i32, i32
  }
  func.func @transform_2(%arg0: i32) -> (i32, i32) {
    %c0_i32 = arith.constant 0 : i32
    %c0_i32_0 = arith.constant 0 : i32
    %c0_i32_1 = arith.constant 0 : i32
    return %c0_i32, %c0_i32_0 : i32, i32
  }
  func.func @transform_3(%arg0: i32) -> (i32, i32) {
    %c0_i32 = arith.constant 0 : i32
    %c0_i32_0 = arith.constant 0 : i32
    %c0_i32_1 = arith.constant 0 : i32
    return %c0_i32, %c0_i32_0 : i32, i32
  }
  func.func @transform_4(%arg0: i32) -> (i32, i32) {
    %c0_i32 = arith.constant 0 : i32
    %c0_i32_0 = arith.constant 0 : i32
    return %arg0, %c0_i32 : i32, i32
  }
}

</mosaic_0001>

<bundles_post_ra>
// kernel: tpu_custom_call.1
= control target key start
LH: loop header
LB: loop body
LE: loop exit
PB: predicated region body
PF: predicated region fallthrough
CT: control target
= control target key end

     0   :  { %9 = vsyncpa [#allocation3], 0  ;;  %s749_s0 = inlined_call_operand.vmem [shape: s32[64,4], index: 0, kind: input, shape index: {}]   ;;  %s750_s1 = inlined_call_operand.vmem [shape: f32[64,32], index: 1, kind: input, shape index: {}]   ;;  %s751_s2 = inlined_call_operand.vmem [shape: f32[64,128], index: 2, kind: input, shape index: {}]   ;;  %s752_s3 = inlined_call_operand.vmem [shape: f32[32,128], index: 3, kind: input, shape index: {}]   ;;  %s753_s4 = inlined_call_operand.hbm [shape: f32[64,128], index: 4, kind: output, shape index: {}]  }
   0x1   :  { %11 = vsyncpa [#allocation3 + $0x1], 0  ;;  %s619_s15 = smov 0   ;;  %s621_s16 = smov 0  }
   0x2   :  { %s623_s17 = smov 0   ;;  %s625_s18 = smov 0  }
   0x3 LB: > { %s640_s19 = sadd.s32 4294967295, %s585_s18   ;;  %s437_s20 = sadd.s32 4294967294, %s585_s18   ;;  %s585_s18 = sphi %s625_s18, %s759_s18   ;;  %s581_s17 = sphi %s623_s17, %s758_s17   ;;  %s577_s16 = sphi %s621_s16, %s757_s16   ;;  %s573_s15 = sphi %s619_s15, %s756_s15  }
   0x4   : > { %s644_s21 = sadd.s32 1, %s585_s18   ;;  %s118_s22 = sadd.s32 1, %s581_s17 }
   0x5   : > { %s115_s23 = ssub.s32 %s585_s18, %s644_s21  ;;  %p128_p0 = scmp.ne.s32.totalorder %s581_s17, %s577_s16 }
   0x6   : > { %p116_p1 = scmp.eq.s32.totalorder %s115_s23, 0  ;;  %p129_p2 = scmp.eq.s32.totalorder %s640_s19, 3 }
   0x7   : > { %p134_p3 = scmp.ne.s32.totalorder %s577_s16, %s573_s15  ;;  %p135_p4 = scmp.eq.s32.totalorder %s437_s20, 3 }
   0x8   : > { %s655_s24 = scalar_select %p116_p1, %s581_s17, %s118_s22  }
   0x9   : > { %p657_p5 = por %p129_p2, %p128_p0  ;;  %p661_p6 = por %p135_p4, %p134_p3 }
   0xa   : > { %p440_p7 = scmp.ge.s32.totalorder %s585_s18, 1  ;;  %p177_p8 = scmp.lt.s32.totalorder %s585_s18, 5 }
   0xc   : > { %p178_p9 = pnand %p440_p7, %p177_p8 }
   0xd   : > { %s442_s27 = sshll.u32 (!%p178_p9), %s640_s19, 1  ;;  %s543_s14 = scalar_lea.hbm (!%p178_p9), %s753_s4, 64 }
   0xe   : > { %181 = sbr.rel (%p178_p9) target bundleno = 293 (0x125), region = 36  ;;  %p209_p10 = scmp.lt.s32.totalorder (!%p178_p9), %s442_s27, 7 }
  0x13   : > { %v587_v0 = vmov 0   ;;  %v588_v1 = vmov 2   ;;  %s761_s27 = smov (!%p209_p10, %s442_s27), 7  ;;  %v589_v8 = vmov 1   ;;  %v590_v9 = vmov 3   ;;  %v278_v12 = vld [vmem:[%s751_s2 + $0x38] sm:$0xff] }
  0x14   : > { %514 = vset.pattern.permute.xlu0 %v587_v0  ;;  %517 = vset.pattern.permute.xlu1 %v588_v1  ;;  %s443_s28 = sshll.u32 %s761_s27, 3  ;;  %v277_v13 = vld [vmem:[%s751_s2 + $0x30] sm:$0xff]  ;;  %v276_v14 = vld [vmem:[%s751_s2 + $0x28] sm:$0xff]  ;;  %v275_v15 = vld [vmem:[%s751_s2 + $0x20] sm:$0xff]  ;;  %vm285_vm0 = vcmask 261120   ;;  %v221_v28 = vlaneseq  ;;  %v591_v33 = vmov 0.0  }
  0x15   : > { %516 = vset.pattern.permute.xlu2 %v587_v0  ;;  %s212_s5 = scalar_lea.vmem %s749_s0, %s443_s28  ;;  %460 = vmatpush.msra.mxu2 %v278_v12  ;;  %v284_v16 = vld [vmem:[%s752_s3 + $0x18] sm:$0xff]  ;;  %v283_v18 = vld [vmem:[%s752_s3 + $0x10] sm:$0xff]  ;;  %v282_v20 = vld [vmem:[%s752_s3 + $0x8] sm:$0xff]  ;;  %s218_s13 = scalar_lea.vmem %s750_s1, %s443_s28  ;;  %vm315_vm4 = vcmask 523264  }
  0x16   : > { %v224_v2 = vld [vmem:[%s212_s5 + $0x8] sm:$0xff]  ;;  %v223_v3 = vld [vmem:[%s212_s5] sm:$0xff]  ;;  %330 = vmatpush.msra.mxu1 %v278_v12  ;;  %456 = vmatpush.msra.mxu3 %v284_v16  ;;  %v274_v17 = vld [vmem:[%s751_s2 + $0x18] sm:$0xff]  ;;  %v222_v30 = vand.u32 127, %v221_v28  ;;  %s205_s27 = sand.u32 1, %s577_s16   ;;  %s455_s28 = sshll.u32 %s640_s19, 4 }
  0x17   : > { %229 = vperm.xlu0 %514, %v224_v2   ;;  %v248_v4 = vadd.s32 32, %v224_v2  ;;  %226 = vperm.xlu2 %516, %v223_v3   ;;  %v236_v5 = vadd.s32 16, %v224_v2  ;;  %v235_v6 = vadd.s32 16, %v223_v3  ;;  %v260_v7 = vadd.s32 48, %v224_v2  ;;  %v273_v19 = vld [vmem:[%s751_s2 + $0x10] sm:$0xff]  ;;  %v272_v21 = vld [vmem:[%s751_s2 + $0x8] sm:$0xff]  ;;  %s359_s6 = scalar_lea.hbm %s753_s4, %s455_s28 }
  0x18   : > { %v259_v10 = vadd.s32 48, %v223_v3  ;;  %v247_v11 = vadd.s32 32, %v223_v3  ;;  %461 = vmatpush.msra.mxu2 %v277_v13  ;;  %331 = vmatpush.msra.mxu1 %v277_v13  ;;  %v281_v22 = vld [vmem:[%s752_s3] sm:$0xff]  ;;  %v280_v24 = vld [vmem:[%s218_s13 + $0x8] sm:$0xff]  ;;  %s441_s29 = sshll.u32 %s205_s27, 4  ;;  %s362_s9 = sshll.u32 %s359_s6, 4  ;;  %s363_s9 = int_to_ptr.hbm [resolvable:$true] %s362_s9 }
  0x19   : > { %253 = vperm.xlu1 %517, %v248_v4   ;;  %304 = vmatpush.msra.mxu0 %v284_v16  ;;  %v271_v23 = vld [vmem:[%s751_s2] sm:$0xff]  ;;  %s207_s7 = scalar_lea.vmem [#allocation2], %s441_s29  ;;  %s348_s19 = scalar_lea.sflag [#allocation3], %s205_s27 }
  0x1a   : > { %462 = vmatpush.msra.mxu2 %v276_v14  ;;  %332 = vmatpush.msra.mxu1 %v276_v14  ;;  %v279_v25 = vld [vmem:[%s218_s13] sm:$0xff]  ;;  %s360_s8 = sshll.u32 %s207_s7, 4  ;;  %s537_s10 = sshra.s32 %s363_s9, 4  ;;  %s361_s8 = int_to_ptr.vmem [resolvable:$true] %s360_s8  ;;  %s538_s10 = int_to_ptr.hbm [resolvable:$true] %s537_s10 }
  0x1b   : > { %457 = vmatpush.msra.mxu3 %v283_v18  ;;  %305 = vmatpush.msra.mxu0 %v283_v18  ;;  %s539_s11 = scalar_lea.hbm %s538_s10, 16  ;;  %p544_p0 = scmp.lt.s32.totalorder %s538_s10, %s753_s4 }
  0x1c   : > { %463 = vmatpush.msra.mxu2 %v275_v15  ;;  %333 = vmatpush.msra.mxu1 %v275_v15  ;;  %p540_p11 = scmp.ne.s32.totalorder %s538_s10, %s539_s11  ;;  %p545_p1 = scmp.lt.s32.totalorder %s543_s14, %s539_s11 }
  0x1d   : > { %458 = vmatpush.msra.mxu3 %v282_v20  ;;  %306 = vmatpush.msra.mxu0 %v282_v20 }
  0x1e   : > { %464 = vmatpush.msra.mxu2 %v274_v17  ;;  %334 = vmatpush.msra.mxu1 %v274_v17  ;;  %p541_p12 = pnand %p540_p11, %p657_p5  ;;  %p546_p2 = por %p545_p1, %p544_p0 }
  0x1f   : > { %515 = vset.pattern.permute.xlu0 %v589_v8  ;;  %519 = vset.pattern.permute.xlu2 %v589_v8 }
  0x20   : > { %241 = vperm.xlu0 %515, %v236_v5   ;;  %238 = vperm.xlu2 %519, %v235_v6   ;;  %p542_p13 = pneg %p541_p12 }
  0x21   : > { %518 = vset.pattern.permute.xlu1 %v590_v9  ;;  %465 = vmatpush.msra.mxu2 %v273_v19 }
  0x22   : > { %265 = vperm.xlu1 %518, %v260_v7   ;;  %335 = vmatpush.msra.mxu1 %v273_v19  ;;  %p547_p3 = pnand %p546_p2, %p542_p13 }
  0x23   : > { %466 = vmatpush.msra.mxu2 %v272_v21  ;;  %459 = vmatpush.msra.mxu3 %v281_v22 }
  0x24   : > { %336 = vmatpush.msra.mxu1 %v272_v21  ;;  %447 = vmatmul.msk.f32.vlgmr.msra.gmra.mxu3 %vm285_vm0, %v280_v24 }
  0x25   : > { %467 = vmatpush.msra.mxu2 %v271_v23  ;;  %307 = vmatpush.msra.mxu0 %v281_v22 }
  0x26   : > { %337 = vmatpush.msra.mxu1 %v271_v23  ;;  %446 = vmatmul.msk.f32.vlgmr.msra.gmra.mxu0 %vm285_vm0, %v279_v25 }
  0x28   : > { %521 = vset.pattern.permute.xlu2 %v590_v9  ;;  %522 = vset.pattern.permute.xlu0 %v590_v9 }
  0x29   : > { %262 = vperm.xlu2 %521, %v259_v10  }
  0x2a   : > { %520 = vset.pattern.permute.xlu1 %v588_v1 }
  0x2b   : > { %250 = vperm.xlu1 %520, %v247_v11  }
  0x71   : > { %v227_v26 = vpop.permute.xlu2 %226 }
  0x72   : > { %vm231_vm6 = vcmp.eq.s32.totalorder %v222_v30, %v227_v26 }
  0x73   : > { %v233_v40 = vsel %vm231_vm6, 1.0, %v591_v33 }
  0x7a   : > { %v239_v31 = vpop.permute.xlu2 %238 }
  0x7b   : > { %vm243_vm7 = vcmp.eq.s32.totalorder %v222_v30, %v239_v31 }
  0x7c   : > { %v245_v42 = vsel %vm243_vm7, 1.0, %v233_v40 }
  0x83   : > { %v263_v39 = vpop.permute.xlu2 %262 }
  0x84   : > { %vm267_vm8 = vcmp.eq.s32.totalorder %v222_v30, %v263_v39 }
  0x89   : > { %v230_v27 = vpop.permute.xlu0 %229 }
  0x8a   : > { %vm232_vm1 = vcmp.eq.s32.totalorder %v222_v30, %v230_v27 }
  0x8b   : > { %v254_v29 = vpop.permute.xlu1 %253  ;;  %v234_v34 = vsel %vm232_vm1, 1.0, %v591_v33 }
  0x8c   : > { %vm256_vm3 = vcmp.eq.s32.totalorder %v222_v30, %v254_v29 }
  0x92   : > { %v242_v32 = vpop.permute.xlu0 %241 }
  0x93   : > { %vm244_vm2 = vcmp.eq.s32.totalorder %v222_v30, %v242_v32 }
  0x94   : > { %v246_v35 = vsel %vm244_vm2, 1.0, %v234_v34  ;;  %v266_v36 = vpop.permute.xlu1 %265 }
  0x95   : > { %v258_v37 = vsel %vm256_vm3, 1.0, %v246_v35  ;;  %vm268_vm5 = vcmp.eq.s32.totalorder %v222_v30, %v266_v36 }
  0x96   : > { %v270_v38 = vsel %vm268_vm5, 1.0, %v258_v37 }
  0x97   : > { %449 = vmatmul.msk.f32.vlgmr.msra.gmra.mxu2 %vm315_vm4, %v270_v38 }
  0x9d   : > { %v251_v41 = vpop.permute.xlu1 %250 }
  0x9e   : > { %vm255_vm9 = vcmp.eq.s32.totalorder %v222_v30, %v251_v41 }
  0x9f   : > { %v257_v43 = vsel %vm255_vm9, 1.0, %v245_v42 }
  0xa0   : > { %v269_v44 = vsel %vm267_vm8, 1.0, %v257_v43 }
  0xa1   : > { %448 = vmatmul.msk.f32.vlgmr.msra.gmra.mxu1 %vm315_vm4, %v269_v44 }
  0xa3   : > { %v309_v48 = vpop.f32.mrf.mxu0 }
  0xa7   : > { %v312_v45 = vpop.f32.mrf.mxu3 }
 0x11a   : > { %v342_v46 = vpop.f32.mrf.mxu2 }
 0x11b   : > { %v343_v47 = vadd.f32 %v342_v46, %v312_v45 }
 0x11d   : > { %346 = vst [vmem:[%s207_s7 + $0x8] sm:$0xff] %v343_v47 }
 0x11e   : > { %v339_v49 = vpop.f32.mrf.mxu1 }
 0x11f   : > { %v340_v50 = vadd.f32 %v339_v49, %v309_v48 }
 0x121   : > { %345 = vst [vmem:[%s207_s7] sm:$0xff] %v340_v50 }
 0x122   : > { %550 = shalt.err (!%p547_p3)
}
 0x123   : > { %s592_s23 = smov 128   ;;  %s593_s27 = smov 8  }
 0x124   : > { %468 = dma.vmem_to_hbm [thread:$0]  (%p657_p5), %s361_s8, 256, %s363_s9, %s348_s19, %s592_s23, %s592_s23, %s593_s27  }
 0x125 PF: > { %p474_p4 = scmp.ge.s32.totalorder %s585_s18, 2  ;;  %s377_s28 = sand.u32 1, %s573_s15  }
 0x126   : > { %s378_s29 = scalar_lea.sflag [#allocation3], %s377_s28 }
 0x127   : > { %p471_p7 = pnand %p474_p4, %p661_p6 }
 0x129   : > { %p472_p8 = pneg %p471_p7 }
 0x12b   : > { %568 = dma.done.wait (%p472_p8), %s378_s29, 256  }
 0x12c   : > { %570 = vsyncadd (%p472_p8), %s378_s29, 4294967040  ;;  %p14_p9 = scmp.ge.s32.totalorder %s644_s21, 6   ;;  %s756_s15 = smov %s577_s16 }
 0x12d   : > { %s757_s16 = smov %s581_s17  ;;  %s758_s17 = smov %s655_s24 }
 0x12e   : > { %s759_s18 = smov %s644_s21  ;;  %16 = sbr.rel (!%p14_p9) target bundleno = 3 (0x3), region = 74 }
 0x133   :  { %384 = vsyncpa [#allocation3], 1 }
 0x134   :  { %386 = vsyncpa [#allocation3 + $0x1], 1 }

</bundles_post_ra>
